<compile_context>
chip_gen: v6e
topology: v6e:2x2x1
jax: 0.10.0
libtpu: 0.0.40
codegen_flags: <defaults>
</compile_context>

<pallas_src>
import functools

import jax
import jax.numpy as jnp
from jax.experimental import pallas as pl
from jax.experimental.pallas import tpu as pltpu

H1, H2, OUT = 200, 500, 60
LEAKY_SLOPE = 0.05
_LANE = 128


def _round_up(n, m):
    return ((n + m - 1) // m) * m


H1P = _round_up(H1, _LANE)  # 256  (hidden dims lane-padded so intermediates are lane-dense)
H2P = _round_up(H2, _LANE)  # 512


def _leaky_relu(x, slope):
    return jnp.where(x > 0, x, slope * x)


def mlp_kernel(x_ref, w1_ref, b1_ref, w2_ref, b2_ref, w3_ref, b3_ref, o_ref):
    # Fully fused: 3 MXU matmuls + 2 VPU LeakyReLUs, everything resident in
    # VMEM.  Matmul inputs use the weights' dtype (bf16 default / f32);
    # accumulation and all elementwise math are f32.
    cdt = w1_ref.dtype
    # Strict f32 path: be explicit so XLA/Mosaic doesn't demote to bf16 passes.
    prec = jax.lax.Precision.HIGHEST if cdt == jnp.float32 else None

    x = x_ref[...].astype(cdt)  # no-op if x already streamed in as bf16

    h1 = jnp.dot(x, w1_ref[...], preferred_element_type=jnp.float32, precision=prec)
    h1 = _leaky_relu(h1 + b1_ref[...], LEAKY_SLOPE)

    h2 = jnp.dot(h1.astype(cdt), w2_ref[...],
                 preferred_element_type=jnp.float32, precision=prec)
    h2 = _leaky_relu(h2 + b2_ref[...], LEAKY_SLOPE)

    h3 = jnp.dot(h2.astype(cdt), w3_ref[...],
                 preferred_element_type=jnp.float32, precision=prec)
    o_ref[...] = (h3 + b3_ref[...]).astype(o_ref.dtype)


def _pad2(a, rows, cols):
    r, c = a.shape
    return jnp.pad(a, ((0, rows - r), (0, cols - c)))


def prepare_params(params, matmul_dtype=jnp.bfloat16):
    """One-time pad + cast of weights/biases. Call once, reuse across forwards.

    Hidden dims are zero-padded to lane multiples (200->256, 500->512); the
    padded rows/columns are zero so the math is unchanged.  The output dim
    (60) is NOT padded: the kernel stores it directly.
    """
    D = params["w1"].shape[0]
    return {
        "w1": _pad2(params["w1"], D, H1P).astype(matmul_dtype),
        "b1": _pad2(params["b1"], 1, H1P).astype(jnp.float32),
        "w2": _pad2(params["w2"], H1P, H2P).astype(matmul_dtype),
        "b2": _pad2(params["b2"], 1, H2P).astype(jnp.float32),
        "w3": _pad2(params["w3"], H2P, OUT).astype(matmul_dtype),
        "b3": params["b3"].astype(jnp.float32),
    }


@functools.partial(jax.jit, static_argnames=("block_b",))
def forward_mlp(x, prepared, *, block_b=1024):
    """Pallas forward pass of Forward_MLP.

    x: [B, input_dim], f32 or bf16 (feed bf16 to halve the input HBM stream).
    prepared: output of prepare_params (bf16 weights recommended on all chips).
    Returns [B, 60] float32.
    """
    B, D = x.shape

    # Batch tile: big enough to amortize per-grid-step overhead, but split so
    # the "parallel" axis has >=2 steps when B allows (keeps both v7x
    # TensorCores busy).  Must be a multiple of 8 (sublane alignment).
    half_b = _round_up(pl.cdiv(B, 2), 8)
    block_b_eff = _round_up(min(block_b, half_b), 8)
    grid = (pl.cdiv(B, block_b_eff),)  # ragged last block is masked by Pallas

    w1, b1 = prepared["w1"], prepared["b1"]
    w2, b2 = prepared["w2"], prepared["b2"]
    w3, b3 = prepared["w3"], prepared["b3"]

    full = lambda a: pl.BlockSpec(a.shape, lambda i: (0, 0))

    w_itemsize = jnp.dtype(w1.dtype).itemsize
    flops = 2 * B * (D * H1P + H1P * H2P + H2P * OUT)
    bytes_accessed = (
        x.size * jnp.dtype(x.dtype).itemsize
        + (w1.size + w2.size + w3.size) * w_itemsize
        + (b1.size + b2.size + b3.size) * 4
        + B * OUT * 4
    )

    return pl.pallas_call(
        mlp_kernel,
        out_shape=jax.ShapeDtypeStruct((B, OUT), jnp.float32),
        grid_spec=pltpu.PrefetchScalarGridSpec(
            num_scalar_prefetch=0,
            grid=grid,
            in_specs=[
                # x tile: last dim == full array dim (legal even if < 128).
                pl.BlockSpec((block_b_eff, D), lambda i: (i, 0)),
                full(w1), full(b1),
                full(w2), full(b2),
                full(w3), full(b3),
            ],
            # Output written directly at width 60 (contiguous rows in HBM),
            # no padded slab and no trailing slice pass.
            out_specs=pl.BlockSpec((block_b_eff, OUT), lambda i: (i, 0)),
        ),
        compiler_params=pltpu.CompilerParams(
            dimension_semantics=("parallel",),
            vmem_limit_bytes=48 * 1024 * 1024,
        ),
        cost_estimate=pl.CostEstimate(
            flops=flops, transcendentals=0, bytes_accessed=bytes_accessed),
    )(x, w1, b1, w2, b2, w3, b3)


def init_params(key, input_dim):
    """Deterministic init matching PyTorch Linear's U(-1/sqrt(fan_in), +) scheme."""
    ks = jax.random.split(key, 6)

    def lin(kw, kb, fan_in, fan_out):
        bound = 1.0 / jnp.sqrt(fan_in)
        w = jax.random.uniform(kw, (fan_in, fan_out), jnp.float32, -bound, bound)
        b = jax.random.uniform(kb, (1, fan_out), jnp.float32, -bound, bound)
        return w, b

    w1, b1 = lin(ks[0], ks[1], input_dim, H1)
    w2, b2 = lin(ks[2], ks[3], H1, H2)
    w3, b3 = lin(ks[4], ks[5], H2, OUT)
    return {"w1": w1, "b1": b1, "w2": w2, "b2": b2, "w3": w3, "b3": b3}


def forward_mlp_ref(x, p):
    h1 = _leaky_relu(x @ p["w1"] + p["b1"], LEAKY_SLOPE)
    h2 = _leaky_relu(h1 @ p["w2"] + p["b2"], LEAKY_SLOPE)
    return h2 @ p["w3"] + p["b3"]


if __name__ == "__main__":
    key = jax.random.PRNGKey(0)
    k_param, k_x1, k_x2 = jax.random.split(key, 3)

    batch, input_dim = 8, 32
    params = init_params(k_param, input_dim)
    x = jax.random.normal(k_x1, (batch, input_dim), jnp.float32)
    ref = forward_mlp_ref(x, params)

    # Recommended fast path on v5e/v6e/v7x: bf16 weights + bf16-streamed x,
    # f32 accumulation. Loose tolerance.
    prep_bf16 = prepare_params(params, jnp.bfloat16)
    out_bf16 = jax.block_until_ready(forward_mlp(x.astype(jnp.bfloat16), prep_bf16))
    assert out_bf16.shape == (batch, OUT)
    assert jnp.allclose(out_bf16, ref, atol=5e-2, rtol=5e-2), "bf16 mismatch vs reference"

    # f32 x with bf16 weights (cast happens in-VMEM inside the kernel).
    out_mixed = jax.block_until_ready(forward_mlp(x, prep_bf16))
    assert jnp.allclose(out_mixed, ref, atol=5e-2, rtol=5e-2), "mixed-dtype mismatch"

    # Strict f32 path (precision=HIGHEST inside the kernel), tight tolerance.
    prep_f32 = prepare_params(params, jnp.float32)
    out_f32 = jax.block_until_ready(forward_mlp(x, prep_f32))
    assert out_f32.shape == (batch, OUT)
    assert jnp.allclose(out_f32, ref, atol=1e-4, rtol=1e-4), "f32 mismatch vs reference"

    # Batch that is not a tile multiple exercises the masked ragged last block.
    batch2 = 100
    x2 = jax.random.normal(k_x2, (batch2, input_dim), jnp.float32)
    out2 = jax.block_until_ready(forward_mlp(x2, prep_bf16))
    ref2 = forward_mlp_ref(x2, params)
    assert out2.shape == (batch2, OUT)
    assert jnp.allclose(out2, ref2, atol=5e-2, rtol=5e-2), "ragged-batch mismatch"

    print("KERNEL_OK")
</pallas_src>

<mosaic_0001>
module attributes {stable_mosaic.version = 11 : i64} {
  func.func @mlp_kernel(%arg0: i32, %arg1: memref<8x32xbf16, #tpu.memory_space<vmem>>, %arg2: memref<32x256xbf16, #tpu.memory_space<vmem>>, %arg3: memref<1x256xf32, #tpu.memory_space<vmem>>, %arg4: memref<256x512xbf16, #tpu.memory_space<vmem>>, %arg5: memref<1x512xf32, #tpu.memory_space<vmem>>, %arg6: memref<512x60xbf16, #tpu.memory_space<vmem>>, %arg7: memref<1x60xf32, #tpu.memory_space<vmem>>, %arg8: memref<8x60xf32, #tpu.memory_space<vmem>>) attributes {dimension_semantics = [#tpu.dimension_semantics<parallel>], iteration_bounds = array<i64: 1>, scalar_prefetch = 0 : i64, scratch_operands = 0 : i64, tpu.core_type = #tpu.core_type<tc>, window_params = [{transform_indices = @transform_0, window_bounds = array<i64: 8, 32>}, {pipeline_mode = #tpu.pipeline_mode<synchronous>, transform_indices = @transform_1, window_bounds = array<i64: 32, 256>}, {pipeline_mode = #tpu.pipeline_mode<synchronous>, transform_indices = @transform_2, window_bounds = array<i64: 1, 256>}, {pipeline_mode = #tpu.pipeline_mode<synchronous>, transform_indices = @transform_3, window_bounds = array<i64: 256, 512>}, {pipeline_mode = #tpu.pipeline_mode<synchronous>, transform_indices = @transform_4, window_bounds = array<i64: 1, 512>}, {pipeline_mode = #tpu.pipeline_mode<synchronous>, transform_indices = @transform_5, window_bounds = array<i64: 512, 60>}, {pipeline_mode = #tpu.pipeline_mode<synchronous>, transform_indices = @transform_6, window_bounds = array<i64: 1, 60>}, {transform_indices = @transform_7, window_bounds = array<i64: 8, 60>}]} {
    %c0 = arith.constant 0 : index
    %c0_0 = arith.constant 0 : index
    %0 = vector.load %arg1[%c0, %c0_0] : memref<8x32xbf16, #tpu.memory_space<vmem>>, vector<8x32xbf16>
    %c0_1 = arith.constant 0 : index
    %c0_2 = arith.constant 0 : index
    %1 = vector.load %arg2[%c0_1, %c0_2] : memref<32x256xbf16, #tpu.memory_space<vmem>>, vector<32x256xbf16>
    %cst = arith.constant dense<0.000000e+00> : vector<8x256xf32>
    %2 = tpu.matmul %0, %1, %cst {dimension_numbers = #tpu.dot_dimension_numbers<[1], [0], [0], [1], [0, 0, 1, 1], [], []>} : vector<8x32xbf16>, vector<32x256xbf16>, vector<8x256xf32> -> vector<8x256xf32>
    %c0_3 = arith.constant 0 : index
    %c0_4 = arith.constant 0 : index
    %3 = vector.load %arg3[%c0_3, %c0_4] : memref<1x256xf32, #tpu.memory_space<vmem>>, vector<1x256xf32>
    %4 = vector.broadcast %3 : vector<1x256xf32> to vector<8x256xf32>
    %5 = arith.addf %2, %4 : vector<8x256xf32>
    %cst_5 = arith.constant 0.000000e+00 : f32
    %6 = vector.broadcast %cst_5 : f32 to vector<8x256xf32>
    %7 = arith.cmpf ogt, %5, %6 : vector<8x256xf32>
    %cst_6 = arith.constant 5.000000e-02 : f32
    %8 = vector.broadcast %cst_6 : f32 to vector<8x256xf32>
    %9 = arith.mulf %8, %5 : vector<8x256xf32>
    %10 = arith.select %7, %5, %9 : vector<8x256xi1>, vector<8x256xf32>
    %11 = arith.truncf %10 : vector<8x256xf32> to vector<8x256xbf16>
    %c0_7 = arith.constant 0 : index
    %c0_8 = arith.constant 0 : index
    %12 = vector.load %arg4[%c0_7, %c0_8] : memref<256x512xbf16, #tpu.memory_space<vmem>>, vector<256x512xbf16>
    %cst_9 = arith.constant dense<0.000000e+00> : vector<8x512xf32>
    %13 = tpu.matmul %11, %12, %cst_9 {dimension_numbers = #tpu.dot_dimension_numbers<[1], [0], [0], [1], [0, 0, 1, 1], [], []>} : vector<8x256xbf16>, vector<256x512xbf16>, vector<8x512xf32> -> vector<8x512xf32>
    %c0_10 = arith.constant 0 : index
    %c0_11 = arith.constant 0 : index
    %14 = vector.load %arg5[%c0_10, %c0_11] : memref<1x512xf32, #tpu.memory_space<vmem>>, vector<1x512xf32>
    %15 = vector.broadcast %14 : vector<1x512xf32> to vector<8x512xf32>
    %16 = arith.addf %13, %15 : vector<8x512xf32>
    %cst_12 = arith.constant 0.000000e+00 : f32
    %17 = vector.broadcast %cst_12 : f32 to vector<8x512xf32>
    %18 = arith.cmpf ogt, %16, %17 : vector<8x512xf32>
    %cst_13 = arith.constant 5.000000e-02 : f32
    %19 = vector.broadcast %cst_13 : f32 to vector<8x512xf32>
    %20 = arith.mulf %19, %16 : vector<8x512xf32>
    %21 = arith.select %18, %16, %20 : vector<8x512xi1>, vector<8x512xf32>
    %22 = arith.truncf %21 : vector<8x512xf32> to vector<8x512xbf16>
    %c0_14 = arith.constant 0 : index
    %c0_15 = arith.constant 0 : index
    %23 = vector.load %arg6[%c0_14, %c0_15] : memref<512x60xbf16, #tpu.memory_space<vmem>>, vector<512x60xbf16>
    %cst_16 = arith.constant dense<0.000000e+00> : vector<8x60xf32>
    %24 = tpu.matmul %22, %23, %cst_16 {dimension_numbers = #tpu.dot_dimension_numbers<[1], [0], [0], [1], [0, 0, 1, 1], [], []>} : vector<8x512xbf16>, vector<512x60xbf16>, vector<8x60xf32> -> vector<8x60xf32>
    %c0_17 = arith.constant 0 : index
    %c0_18 = arith.constant 0 : index
    %25 = vector.load %arg7[%c0_17, %c0_18] : memref<1x60xf32, #tpu.memory_space<vmem>>, vector<1x60xf32>
    %26 = vector.broadcast %25 : vector<1x60xf32> to vector<8x60xf32>
    %27 = arith.addf %24, %26 : vector<8x60xf32>
    %c0_19 = arith.constant 0 : index
    %c0_20 = arith.constant 0 : index
    %28 = vector.load %arg8[%c0_19, %c0_20] : memref<8x60xf32, #tpu.memory_space<vmem>>, vector<8x60xf32>
    tpu.vector_store %arg8[%c0_19, %c0_20], %27 {strides = array<i32>} : memref<8x60xf32, #tpu.memory_space<vmem>>, vector<8x60xf32>,
    return
  }
  func.func @transform_0(%arg0: i32) -> (i32, i32) {
    %c0_i32 = arith.constant 0 : i32
    %c0_i32_0 = arith.constant 0 : i32
    return %arg0, %c0_i32 : i32, i32
  }
  func.func @transform_1(%arg0: i32) -> (i32, i32) {
    %c0_i32 = arith.constant 0 : i32
    %c0_i32_0 = arith.constant 0 : i32
    %c0_i32_1 = arith.constant 0 : i32
    return %c0_i32, %c0_i32_0 : i32, i32
  }
  func.func @transform_2(%arg0: i32) -> (i32, i32) {
    %c0_i32 = arith.constant 0 : i32
    %c0_i32_0 = arith.constant 0 : i32
    %c0_i32_1 = arith.constant 0 : i32
    return %c0_i32, %c0_i32_0 : i32, i32
  }
  func.func @transform_3(%arg0: i32) -> (i32, i32) {
    %c0_i32 = arith.constant 0 : i32
    %c0_i32_0 = arith.constant 0 : i32
    %c0_i32_1 = arith.constant 0 : i32
    return %c0_i32, %c0_i32_0 : i32, i32
  }
  func.func @transform_4(%arg0: i32) -> (i32, i32) {
    %c0_i32 = arith.constant 0 : i32
    %c0_i32_0 = arith.constant 0 : i32
    %c0_i32_1 = arith.constant 0 : i32
    return %c0_i32, %c0_i32_0 : i32, i32
  }
  func.func @transform_5(%arg0: i32) -> (i32, i32) {
    %c0_i32 = arith.constant 0 : i32
    %c0_i32_0 = arith.constant 0 : i32
    %c0_i32_1 = arith.constant 0 : i32
    return %c0_i32, %c0_i32_0 : i32, i32
  }
  func.func @transform_6(%arg0: i32) -> (i32, i32) {
    %c0_i32 = arith.constant 0 : i32
    %c0_i32_0 = arith.constant 0 : i32
    %c0_i32_1 = arith.constant 0 : i32
    return %c0_i32, %c0_i32_0 : i32, i32
  }
  func.func @transform_7(%arg0: i32) -> (i32, i32) {
    %c0_i32 = arith.constant 0 : i32
    %c0_i32_0 = arith.constant 0 : i32
    return %arg0, %c0_i32 : i32, i32
  }
}

</mosaic_0001>

<bundles_post_ra>
// kernel: forward_mlp.1
= control target key start
LH: loop header
LB: loop body
LE: loop exit
PB: predicated region body
PF: predicated region fallthrough
CT: control target
= control target key end

     0   :  { %12 = vsyncpa [#allocation3], 0  ;;  %s1510_s0 = inlined_call_operand.vmem [shape: bf16[8,32], index: 0, kind: input, shape index: {}]   ;;  %s1511_s1 = inlined_call_operand.vmem [shape: bf16[32,256], index: 1, kind: input, shape index: {}]   ;;  %s1512_s2 = inlined_call_operand.vmem [shape: f32[1,256], index: 2, kind: input, shape index: {}]   ;;  %s1513_s3 = inlined_call_operand.hbm [shape: bf16[256,512], index: 3, kind: input, shape index: {}]   ;;  %s1514_s4 = inlined_call_operand.vmem [shape: f32[1,512], index: 4, kind: input, shape index: {}]   ;;  %s1515_s5 = inlined_call_operand.vmem [shape: bf16[512,60], index: 5, kind: input, shape index: {}]   ;;  %s1516_s6 = inlined_call_operand.vmem [shape: f32[1,60], index: 6, kind: input, shape index: {}]   ;;  %s1517_s7 = inlined_call_operand.hbm [shape: f32[8,60], index: 7, kind: output, shape index: {}]  }
   0x1   :  { %13 = vsyncpa [#allocation4], 0  ;;  %s1325_s24 = smov [#allocation2]  }
   0x2   :  { %s25_s25 = sshll.u32 %s1325_s24, 4  ;;  %s26_s25 = int_to_ptr.vmem [resolvable:$true] %s25_s25 }
   0x3   :  { %s1289_s26 = scalar_lea.vmem %s26_s25, 8192  ;;  %p1294_p1 = scmp.lt.s32.totalorder %s26_s25, %s26_s25 }
   0x4   :  { %p1290_p0 = scmp.ne.s32.totalorder %s26_s25, %s1289_s26  ;;  %p1295_p2 = scmp.lt.s32.totalorder %s1289_s26, %s1289_s26 }
   0x6   :  { %p1296_p3 = por %p1295_p2, %p1294_p1 }
   0x8   :  { %p1297_p4 = pnand %p1296_p3, %p1290_p0 }
   0xa   :  { %1300 = shalt.err (!%p1297_p4)
}
   0xb   :  { %s1326_s27 = smov 256   ;;  %s1327_s28 = smov 16  }
   0xc   :  { %31 = dma.hbm_to_vmem [thread:$0]  %s1513_s3, 8192, %s26_s25, [#allocation3], %s1326_s27, %s1326_s27, %s1327_s28  }
   0xd   :  { %1321 = dma.done.wait [#allocation3], 8192  }
   0xe   :  { %1322 = vsyncadd [#allocation3], 4294959104  ;;  %v1328_v0 = vmov 0   ;;  %v1147_v1 = vld [vmem:[%s1511_s1 + $0x14] ss:$8 sps:$4 sm:$0xff]   ;;  %vm79_vm0 = vcmask 261120  }
   0xf   :  { %115 = vmatprep.mubr.bf16.mxu0 %v1328_v0  ;;  %v1149_v2 = vld [vmem:[%s1511_s1 + $0x10] ss:$8 sps:$4 sm:$0xff]   ;;  %95 = vmatprep.subr.bf16.mxu0 %v1147_v1  ;;  %v1150_v3 = vld [vmem:[%s1511_s1 + $0x4] ss:$8 sps:$4 sm:$0xff]   ;;  %v1152_v4 = vld [vmem:[%s1511_s1] ss:$8 sps:$4 sm:$0xff]  }
  0x10   :  { %96 = vmatpush1.bf16.msra.mxu0 %v1149_v2  ;;  %v1153_v5 = vld [vmem:[#allocation2 + $0xe4] ss:$16 sps:$4 sm:$0xff]   ;;  %v42_v6 = vld [vmem:[%s1510_s0] sm:$0xf]  ;;  %v1157_v7 = vld [vmem:[#allocation2 + $0xec] ss:$16 sps:$4 sm:$0xff]  }
  0x11   :  { %97 = vmatprep.subr.bf16.mxu0 %v1150_v3  ;;  %538 = vmatprep.subr.bf16.mxu1 %v1153_v5  ;;  %v1158_v8 = vld [vmem:[#allocation2 + $0xe0] ss:$16 sps:$4 sm:$0xff]   ;;  %v1159_v9 = vld [vmem:[#allocation2 + $0xc4] ss:$16 sps:$4 sm:$0xff]   ;;  %v1155_v10 = vld [vmem:[#allocation2 + $0xe8] ss:$16 sps:$4 sm:$0xff]  }
  0x12   :  { %539 = vmatpush1.bf16.msra.mxu1 %v1158_v8  ;;  %v1163_v11 = vld [vmem:[#allocation2 + $0xcc] ss:$16 sps:$4 sm:$0xff]   ;;  %v1164_v12 = vld [vmem:[#allocation2 + $0xc0] ss:$16 sps:$4 sm:$0xff]   ;;  %v1165_v13 = vld [vmem:[#allocation2 + $0xa4] ss:$16 sps:$4 sm:$0xff]   ;;  %v49_v8 = vlaneseq }
  0x13   :  { %540 = vmatprep.subr.bf16.mxu1 %v1159_v9  ;;  %v1161_v14 = vld [vmem:[#allocation2 + $0xc8] ss:$16 sps:$4 sm:$0xff]   ;;  %v1169_v15 = vld [vmem:[#allocation2 + $0xac] ss:$16 sps:$4 sm:$0xff]   ;;  %v1170_v16 = vld [vmem:[#allocation2 + $0xa0] ss:$16 sps:$4 sm:$0xff]  }
  0x14   :  { %98 = vmatpush1.bf16.msra.mxu0 %v1152_v4  ;;  %v1171_v17 = vld [vmem:[#allocation2 + $0x84] ss:$16 sps:$4 sm:$0xff]   ;;  %v1167_v18 = vld [vmem:[#allocation2 + $0xa8] ss:$16 sps:$4 sm:$0xff]   ;;  %v1175_v19 = vld [vmem:[#allocation2 + $0x8c] ss:$16 sps:$4 sm:$0xff]  }
  0x15   :  { %579 = vmatprep.subr.bf16.mxu0 %v1157_v7  ;;  %v1176_v20 = vld [vmem:[#allocation2 + $0x80] ss:$16 sps:$4 sm:$0xff]   ;;  %v1177_v21 = vld [vmem:[#allocation2 + $0x64] ss:$16 sps:$4 sm:$0xff]   ;;  %v1173_v22 = vld [vmem:[#allocation2 + $0x88] ss:$16 sps:$4 sm:$0xff]  }
  0x16   :  { %541 = vmatpush1.bf16.msra.mxu1 %v1164_v12  ;;  %v1181_v23 = vld [vmem:[#allocation2 + $0x6c] ss:$16 sps:$4 sm:$0xff]   ;;  %v1182_v24 = vld [vmem:[#allocation2 + $0x60] ss:$16 sps:$4 sm:$0xff]   ;;  %v1183_v25 = vld [vmem:[#allocation2 + $0x44] ss:$16 sps:$4 sm:$0xff]  }
  0x17   :  { %1000 = vmatmul.mubr.msk.bf16.vlgmr.msra.gmra.mxu0 %vm79_vm0, %v42_v6  ;;  %542 = vmatprep.subr.bf16.mxu1 %v1165_v13  ;;  %v1179_v26 = vld [vmem:[#allocation2 + $0x68] ss:$16 sps:$4 sm:$0xff]   ;;  %v1187_v27 = vld [vmem:[#allocation2 + $0x4c] ss:$16 sps:$4 sm:$0xff]   ;;  %v1188_v28 = vld [vmem:[#allocation2 + $0x40] ss:$16 sps:$4 sm:$0xff]  }
  0x18   :  { %580 = vmatpush1.bf16.msra.mxu0 %v1155_v10  ;;  %v1189_v29 = vld [vmem:[#allocation2 + $0x24] ss:$16 sps:$4 sm:$0xff]   ;;  %v1185_v30 = vld [vmem:[#allocation2 + $0x48] ss:$16 sps:$4 sm:$0xff]   ;;  %v1193_v31 = vld [vmem:[#allocation2 + $0x2c] ss:$16 sps:$4 sm:$0xff]  }
  0x19   :  { %581 = vmatprep.subr.bf16.mxu0 %v1163_v11  ;;  %v1194_v32 = vld [vmem:[#allocation2 + $0x20] ss:$16 sps:$4 sm:$0xff]   ;;  %v1195_v33 = vld [vmem:[#allocation2 + $0x4] ss:$16 sps:$4 sm:$0xff]   ;;  %v1191_v34 = vld [vmem:[#allocation2 + $0x28] ss:$16 sps:$4 sm:$0xff]  }
  0x1a   :  { %543 = vmatpush1.bf16.msra.mxu1 %v1170_v16  ;;  %v1199_v35 = vld [vmem:[#allocation2 + $0xc] ss:$16 sps:$4 sm:$0xff]   ;;  %v1200_v36 = vld [vmem:[#allocation2] ss:$16 sps:$4 sm:$0xff]   ;;  %v1201_v37 = vld [vmem:[#allocation2 + $0x1e4] ss:$16 sps:$4 sm:$0xff]  }
  0x1b   :  { %544 = vmatprep.subr.bf16.mxu1 %v1171_v17  ;;  %v1197_v38 = vld [vmem:[#allocation2 + $0x8] ss:$16 sps:$4 sm:$0xff]   ;;  %v1205_v39 = vld [vmem:[#allocation2 + $0x1ec] ss:$16 sps:$4 sm:$0xff]   ;;  %v1206_v40 = vld [vmem:[#allocation2 + $0x1e0] ss:$16 sps:$4 sm:$0xff]  }
  0x1c   :  { %582 = vmatpush1.bf16.msra.mxu0 %v1161_v14  ;;  %v1207_v41 = vld [vmem:[#allocation2 + $0x1c4] ss:$16 sps:$4 sm:$0xff]   ;;  %v1203_v42 = vld [vmem:[#allocation2 + $0x1e8] ss:$16 sps:$4 sm:$0xff]   ;;  %v1211_v43 = vld [vmem:[#allocation2 + $0x1cc] ss:$16 sps:$4 sm:$0xff]  }
  0x1d   :  { %583 = vmatprep.subr.bf16.mxu0 %v1169_v15  ;;  %v1212_v44 = vld [vmem:[#allocation2 + $0x1c0] ss:$16 sps:$4 sm:$0xff]   ;;  %v1213_v45 = vld [vmem:[#allocation2 + $0x1a4] ss:$16 sps:$4 sm:$0xff]   ;;  %v1209_v46 = vld [vmem:[#allocation2 + $0x1c8] ss:$16 sps:$4 sm:$0xff]  }
  0x1e   :  { %545 = vmatpush1.bf16.msra.mxu1 %v1176_v20  ;;  %v1218_v47 = vld [vmem:[#allocation2 + $0x1a0] ss:$16 sps:$4 sm:$0xff]   ;;  %v1217_v48 = vld [vmem:[#allocation2 + $0x1ac] ss:$16 sps:$4 sm:$0xff]   ;;  %v1219_v49 = vld [vmem:[#allocation2 + $0x184] ss:$16 sps:$4 sm:$0xff]  }
  0x1f   :  { %546 = vmatprep.subr.bf16.mxu1 %v1177_v21  ;;  %v1215_v50 = vld [vmem:[#allocation2 + $0x1a8] ss:$16 sps:$4 sm:$0xff]   ;;  %v1224_v51 = vld [vmem:[#allocation2 + $0x180] ss:$16 sps:$4 sm:$0xff]   ;;  %v1223_v52 = vld [vmem:[#allocation2 + $0x18c] ss:$16 sps:$4 sm:$0xff]  }
  0x20   :  { %584 = vmatpush1.bf16.msra.mxu0 %v1167_v18  ;;  %v1225_v53 = vld [vmem:[#allocation2 + $0x164] ss:$16 sps:$4 sm:$0xff]   ;;  %v1221_v54 = vld [vmem:[#allocation2 + $0x188] ss:$16 sps:$4 sm:$0xff]   ;;  %v1230_v55 = vld [vmem:[#allocation2 + $0x160] ss:$16 sps:$4 sm:$0xff]  }
  0x21   :  { %585 = vmatprep.subr.bf16.mxu0 %v1175_v19  ;;  %v1229_v56 = vld [vmem:[#allocation2 + $0x16c] ss:$16 sps:$4 sm:$0xff]   ;;  %v1231_v57 = vld [vmem:[#allocation2 + $0x144] ss:$16 sps:$4 sm:$0xff]   ;;  %v1227_v58 = vld [vmem:[#allocation2 + $0x168] ss:$16 sps:$4 sm:$0xff]  }
  0x22   :  { %547 = vmatpush1.bf16.msra.mxu1 %v1182_v24  ;;  %v1235_v59 = vld [vmem:[#allocation2 + $0x14c] ss:$16 sps:$4 sm:$0xff]   ;;  %v1233_v60 = vld [vmem:[#allocation2 + $0x148] ss:$16 sps:$4 sm:$0xff]   ;;  %v1236_v61 = vld [vmem:[#allocation2 + $0x140] ss:$16 sps:$4 sm:$0xff]  }
  0x23   :  { %548 = vmatprep.subr.bf16.mxu1 %v1183_v25  ;;  %v1237_v62 = vld [vmem:[#allocation2 + $0x124] ss:$16 sps:$4 sm:$0xff]   ;;  %v1241_v63 = vld [vmem:[#allocation2 + $0x12c] ss:$16 sps:$4 sm:$0xff]   ;;  %v1239_v0 = vld [vmem:[#allocation2 + $0x128] ss:$16 sps:$4 sm:$0xff]  }
  0x24   :  { %586 = vmatpush1.bf16.msra.mxu0 %v1173_v22  ;;  %v1242_v1 = vld [vmem:[#allocation2 + $0x120] ss:$16 sps:$4 sm:$0xff]   ;;  %v1243_v2 = vld [vmem:[#allocation2 + $0x104] ss:$16 sps:$4 sm:$0xff]   ;;  %v1247_v3 = vld [vmem:[#allocation2 + $0x10c] ss:$16 sps:$4 sm:$0xff]  }
  0x25   :  { %587 = vmatprep.subr.bf16.mxu0 %v1181_v23  ;;  %v1245_v4 = vld [vmem:[#allocation2 + $0x108] ss:$16 sps:$4 sm:$0xff]   ;;  %v1248_v5 = vld [vmem:[#allocation2 + $0x100] ss:$16 sps:$4 sm:$0xff]   ;;  %v1394_v9 = vshrl.u32 %v49_v8, 7  ;;  %s1329_s28 = smov [#allocation5]  }
  0x26   :  { %549 = vmatpush1.bf16.msra.mxu1 %v1188_v28  ;;  %v1249_v6 = vld [vmem:[%s1515_s5 + $0x78] sm:$0xff]   ;;  %v47_v11 = vld [vmem:[%s1512_s2] sm:$0x3]  ;;  %s987_s29 = sshll.u32 %s1329_s28, 4  ;;  %vm979_vm7 = vcmask 490496   ;;  %s988_s29 = int_to_ptr.vmem [resolvable:$true] %s987_s29 }
  0x27   :  { %550 = vmatprep.subr.bf16.mxu1 %v1189_v29  ;;  %v1250_v7 = vld [vmem:[%s1515_s5 + $0xf8] sm:$0xff]   ;;  %v51_v10 = vsub.s32 0, %v1394_v9  ;;  %v55_v12 = vsub.s32 1, %v1394_v9  ;;  %v1253_v29 = vld [vmem:[%s1515_s5 + $0x70] sm:$0xff]   ;;  %s1301_s30 = scalar_lea.vmem %s988_s29, 128  ;;  %p1306_p6 = scmp.lt.s32.totalorder %s988_s29, %s988_s29 }
  0x28   :  { %588 = vmatpush1.bf16.msra.mxu0 %v1179_v26  ;;  %v1251_v26 = vld [vmem:[%s1515_s5 + $0x38] sm:$0xff]   ;;  %p1302_p5 = scmp.ne.s32.totalorder %s988_s29, %s1301_s30  ;;  %p1307_p7 = scmp.lt.s32.totalorder %s1301_s30, %s1301_s30 }
  0x29   :  { %589 = vmatprep.subr.bf16.mxu0 %v1187_v27  ;;  %v52_v13 = vrot.slane %v47_v11, %v51_v10  ;;  %v56_v14 = vrot.slane %v47_v11, %v55_v12  ;;  %v1252_v27 = vld [vmem:[%s1515_s5 + $0xb8] sm:$0xff]  }
  0x2a   :  { %551 = vmatpush1.bf16.msra.mxu1 %v1194_v32  ;;  %v1256_v32 = vld [vmem:[%s1515_s5 + $0xb0] sm:$0xff]   ;;  %p1308_p8 = por %p1307_p7, %p1306_p6 }
  0x2b   :  { %552 = vmatprep.subr.bf16.mxu1 %v1195_v33  ;;  %v1257_v33 = vld [vmem:[%s1515_s5 + $0x68] sm:$0xff]  }
  0x2c   :  { %590 = vmatpush1.bf16.msra.mxu0 %v1185_v30  ;;  %v1254_v30 = vld [vmem:[%s1515_s5 + $0xf0] sm:$0xff]   ;;  %p1309_p9 = pnand %p1308_p8, %p1302_p5 }
  0x2d   :  { %591 = vmatprep.subr.bf16.mxu0 %v1193_v31  ;;  %v1255_v31 = vld [vmem:[%s1515_s5 + $0x30] sm:$0xff]  }
  0x2e   :  { %553 = vmatpush1.bf16.msra.mxu1 %v1200_v36  ;;  %v1260_v36 = vld [vmem:[%s1515_s5 + $0xa8] sm:$0xff]  }
  0x2f   :  { %554 = vmatprep.subr.bf16.mxu1 %v1201_v37  ;;  %v1261_v37 = vld [vmem:[%s1515_s5 + $0x60] sm:$0xff]  }
  0x30   :  { %592 = vmatpush1.bf16.msra.mxu0 %v1191_v34  ;;  %v1258_v34 = vld [vmem:[%s1515_s5 + $0xe8] sm:$0xff]  }
  0x31   :  { %593 = vmatprep.subr.bf16.mxu0 %v1199_v35  ;;  %v1259_v35 = vld [vmem:[%s1515_s5 + $0x28] sm:$0xff]  }
  0x32   :  { %555 = vmatpush2.bf16.msra.mxu1 %v1206_v40  ;;  %v1264_v40 = vld [vmem:[%s1515_s5 + $0xa0] sm:$0xff]  }
  0x33   :  { %556 = vmatprep.subr.bf16.mxu1 %v1207_v41  ;;  %v1265_v41 = vld [vmem:[%s1515_s5 + $0x58] sm:$0xff]  }
  0x34   :  { %594 = vmatpush1.bf16.msra.mxu0 %v1197_v38  ;;  %v1262_v38 = vld [vmem:[%s1515_s5 + $0xe0] sm:$0xff]  }
  0x35   :  { %595 = vmatprep.subr.bf16.mxu0 %v1205_v39  ;;  %v1263_v39 = vld [vmem:[%s1515_s5 + $0x20] sm:$0xff]  }
  0x36   :  { %557 = vmatpush2.bf16.msra.mxu1 %v1212_v44  ;;  %v1268_v44 = vld [vmem:[%s1515_s5 + $0x98] sm:$0xff]  }
  0x37   :  { %558 = vmatprep.subr.bf16.mxu1 %v1213_v45  ;;  %v1269_v45 = vld [vmem:[%s1515_s5 + $0x50] sm:$0xff]  }
  0x38   :  { %596 = vmatpush2.bf16.msra.mxu0 %v1203_v42  ;;  %v1266_v42 = vld [vmem:[%s1515_s5 + $0xd8] sm:$0xff]  }
  0x39   :  { %597 = vmatprep.subr.bf16.mxu0 %v1211_v43  ;;  %v1267_v43 = vld [vmem:[%s1515_s5 + $0x18] sm:$0xff]  }
  0x3a   :  { %559 = vmatpush2.bf16.msra.mxu1 %v1218_v47  ;;  %v1271_v47 = vld [vmem:[%s1515_s5 + $0x10] sm:$0xff]  }
  0x3b   :  { %560 = vmatprep.subr.bf16.mxu1 %v1219_v49  ;;  %v1273_v49 = vld [vmem:[%s1515_s5 + $0x48] sm:$0xff]  }
  0x3c   :  { %598 = vmatpush2.bf16.msra.mxu0 %v1209_v46  ;;  %v1270_v46 = vld [vmem:[%s1515_s5 + $0xd0] sm:$0xff]  }
  0x3d   :  { %599 = vmatprep.subr.bf16.mxu0 %v1217_v48  ;;  %v1272_v48 = vld [vmem:[%s1515_s5 + $0x90] sm:$0xff]  }
  0x3e   :  { %561 = vmatpush2.bf16.msra.mxu1 %v1224_v51  ;;  %v1275_v51 = vld [vmem:[%s1515_s5 + $0x8] sm:$0xff]  }
  0x3f   :  { %562 = vmatprep.subr.bf16.mxu1 %v1225_v53  ;;  %v1277_v53 = vld [vmem:[%s1515_s5 + $0x40] sm:$0xff]  }
  0x40   :  { %600 = vmatpush2.bf16.msra.mxu0 %v1215_v50  ;;  %v1274_v50 = vld [vmem:[%s1515_s5 + $0xc8] sm:$0xff]  }
  0x41   :  { %601 = vmatprep.subr.bf16.mxu0 %v1223_v52  ;;  %v1276_v52 = vld [vmem:[%s1515_s5 + $0x88] sm:$0xff]  }
  0x42   :  { %563 = vmatpush2.bf16.msra.mxu1 %v1230_v55  ;;  %v1279_v55 = vld [vmem:[%s1515_s5] sm:$0xff]  }
  0x43   :  { %564 = vmatprep.subr.bf16.mxu1 %v1231_v57  ;;  %v208_v57 = vsub.s32 2, %v1394_v9 }
  0x44   :  { %602 = vmatpush2.bf16.msra.mxu0 %v1221_v54  ;;  %v1278_v54 = vld [vmem:[%s1515_s5 + $0xc0] sm:$0xff]  }
  0x45   :  { %603 = vmatprep.subr.bf16.mxu0 %v1229_v56  ;;  %v1280_v56 = vld [vmem:[%s1515_s5 + $0x80] sm:$0xff]  }
  0x46   :  { %565 = vmatpush2.bf16.msra.mxu1 %v1236_v61 }
  0x47   :  { %566 = vmatprep.subr.bf16.mxu1 %v1237_v62 }
  0x48   :  { %604 = vmatpush2.bf16.msra.mxu0 %v1227_v58  ;;  %v196_v58 = vld [vmem:[%s1514_s4] sm:$0xf] }
  0x49   :  { %605 = vmatprep.subr.bf16.mxu0 %v1235_v59  ;;  %v212_v59 = vsub.s32 3, %v1394_v9  ;;  %v209_v61 = vrot.slane %v196_v58, %v208_v57 }
  0x4a   :  { %567 = vmatpush2.bf16.msra.mxu1 %v1242_v1 }
  0x4b   :  { %568 = vmatprep.subr.bf16.mxu1 %v1243_v2  ;;  %v213_v1 = vrot.slane %v196_v58, %v212_v59 }
  0x4c   :  { %606 = vmatpush2.bf16.msra.mxu0 %v1233_v60  ;;  %v201_v60 = vrot.slane %v196_v58, %v51_v10 }
  0x4d   :  { %607 = vmatprep.subr.bf16.mxu0 %v1241_v63 }
  0x4e   :  { %569 = vmatpush2.bf16.msra.mxu1 %v1248_v5 }
  0x4f   :  { %1098 = vmatprep.subr.bf16.mxu1 %v1249_v6 }
  0x50   :  { %608 = vmatpush2.bf16.msra.mxu0 %v1239_v0  ;;  %v205_v0 = vrot.slane %v196_v58, %v55_v12 }
  0x51   :  { %609 = vmatprep.subr.bf16.mxu0 %v1247_v3 }
  0x54   :  { %610 = vmatpush2.bf16.msra.mxu0 %v1245_v4 }
  0x55   :  { %1120 = vmatprep.subr.bf16.mxu0 %v1250_v7 }
  0xd7   :  { %v117_v15 = vpop.f32.mrf.mxu0 }
  0xd8   :  { %v118_v16 = vadd.f32 %v117_v15, %v52_v13 }
  0xd9   :  { %v119_v17 = vpop.f32.mrf.mxu0 }
  0xda   :  { %vm124_vm1 = vcmp.gt.f32.partialorder %v118_v16, 0.0  ;;  %v126_v18 = vmul.f32 0.05, %v118_v16  ;;  %v120_v19 = vadd.f32 %v119_v17, %v56_v14 }
  0xdb   :  { %v121_v20 = vpop.f32.mrf.mxu0 }
  0xdc   :  { %v127_v21 = vmul.f32 0.05, %v120_v19  ;;  %vm125_vm2 = vcmp.gt.f32.partialorder %v120_v19, 0.0  ;;  %v128_v23 = vsel %vm124_vm1, %v118_v16, %v126_v18 }
  0xdd   :  { %v122_v22 = vpop.f32.mrf.mxu0  ;;  %v130_v28 = vpack.c.bf16 %v128_v23, %v128_v23 }
  0xde   :  { %v129_v24 = vsel %vm125_vm2, %v120_v19, %v127_v21 }
  0xdf   :  { %v131_v25 = vpack.c.bf16 %v129_v24, %v129_v24 }
  0xe1   :  { %570 = vmatprep.mubr.bf16.mxu1 %v131_v25  ;;  %611 = vmatprep.mubr.bf16.mxu0 %v131_v25 }
  0xe2   :  { %571 = vmatmul.mubr.bf16.vlgmr.msra.gmra.mxu1 %v130_v28  ;;  %612 = vmatmul.mubr.bf16.vlgmr.msra.gmra.mxu0 %v130_v28 }
  0xe3   :  { %1099 = vmatpush3.bf16.msra.mxu1 %v1251_v26  ;;  %1121 = vmatpush3.bf16.msra.mxu0 %v1252_v27  ;;  %v1065_v26 = vld [vmem:[%s1516_s6] ss:$0 sm:$0xff] }
  0xe4   :  { %1100 = vmatprep.subr.bf16.mxu1 %v1253_v29  ;;  %1122 = vmatprep.subr.bf16.mxu0 %v1254_v30 }
  0xe7   :  { %1101 = vmatpush3.bf16.msra.mxu1 %v1255_v31  ;;  %1123 = vmatpush3.bf16.msra.mxu0 %v1256_v32 }
  0xe8   :  { %1102 = vmatprep.subr.bf16.mxu1 %v1257_v33  ;;  %1124 = vmatprep.subr.bf16.mxu0 %v1258_v34 }
  0xeb   :  { %1103 = vmatpush3.bf16.msra.mxu1 %v1259_v35  ;;  %1125 = vmatpush3.bf16.msra.mxu0 %v1260_v36 }
  0xec   :  { %1104 = vmatprep.subr.bf16.mxu1 %v1261_v37  ;;  %1126 = vmatprep.subr.bf16.mxu0 %v1262_v38 }
  0xef   :  { %1105 = vmatpush3.bf16.msra.mxu1 %v1263_v39  ;;  %1127 = vmatpush3.bf16.msra.mxu0 %v1264_v40 }
  0xf0   :  { %1106 = vmatprep.subr.bf16.mxu1 %v1265_v41  ;;  %1128 = vmatprep.subr.bf16.mxu0 %v1266_v42 }
  0xf3   :  { %1107 = vmatpush3.bf16.msra.mxu1 %v1267_v43  ;;  %1129 = vmatpush3.bf16.msra.mxu0 %v1268_v44 }
  0xf4   :  { %1108 = vmatprep.subr.bf16.mxu1 %v1269_v45  ;;  %1130 = vmatprep.subr.bf16.mxu0 %v1270_v46 }
  0xf7   :  { %1109 = vmatpush3.bf16.msra.mxu1 %v1271_v47  ;;  %1131 = vmatpush3.bf16.msra.mxu0 %v1272_v48 }
  0xf8   :  { %1110 = vmatprep.subr.bf16.mxu1 %v1273_v49  ;;  %1132 = vmatprep.subr.bf16.mxu0 %v1274_v50 }
  0xfb   :  { %1111 = vmatpush3.bf16.msra.mxu1 %v1275_v51  ;;  %1133 = vmatpush3.bf16.msra.mxu0 %v1276_v52 }
  0xfc   :  { %1112 = vmatprep.subr.bf16.mxu1 %v1277_v53  ;;  %1134 = vmatprep.subr.bf16.mxu0 %v1278_v54 }
  0xff   :  { %1113 = vmatpush3.bf16.msra.mxu1 %v1279_v55  ;;  %1135 = vmatpush3.bf16.msra.mxu0 %v1280_v56 }
 0x1a2   :  { %v572_v62 = vpop.f32.mrf.mxu1  ;;  %v613_v63 = vpop.f32.mrf.mxu0 }
 0x1a3   :  { %v573_v2 = vadd.f32 %v572_v62, %v201_v60  ;;  %v614_v3 = vadd.f32 %v613_v63, %v209_v61 }
 0x1a4   :  { %v574_v4 = vpop.f32.mrf.mxu1  ;;  %v615_v5 = vpop.f32.mrf.mxu0 }
 0x1a5   :  { %v624_v6 = vmul.f32 0.05, %v573_v2  ;;  %vm620_vm3 = vcmp.gt.f32.partialorder %v573_v2, 0.0  ;;  %v626_v7 = vmul.f32 0.05, %v614_v3  ;;  %v575_v8 = vadd.f32 %v574_v4, %v205_v0 }
 0x1a6   :  { %v616_v11 = vadd.f32 %v615_v5, %v213_v1  ;;  %v576_v13 = vpop.f32.mrf.mxu1  ;;  %v617_v14 = vpop.f32.mrf.mxu0  ;;  %vm622_vm4 = vcmp.gt.f32.partialorder %v614_v3, 0.0 }
 0x1a7   :  { %vm621_vm5 = vcmp.gt.f32.partialorder %v575_v8, 0.0  ;;  %v625_v10 = vmul.f32 0.05, %v575_v8  ;;  %v628_v17 = vsel %vm620_vm3, %v573_v2, %v624_v6  ;;  %v630_v12 = vsel %vm622_vm4, %v614_v3, %v626_v7 }
 0x1a8   :  { %v577_v15 = vpop.f32.mrf.mxu1  ;;  %v618_v16 = vpop.f32.mrf.mxu0  ;;  %vm623_vm6 = vcmp.gt.f32.partialorder %v616_v11, 0.0  ;;  %v627_v9 = vmul.f32 0.05, %v616_v11  ;;  %v632_v21 = vpack.c.bf16 %v628_v17, %v628_v17  ;;  %v634_v23 = vpack.c.bf16 %v630_v12, %v630_v12 }
 0x1a9   :  { %v629_v18 = vsel %vm621_vm5, %v575_v8, %v625_v10 }
 0x1aa   :  { %v633_v19 = vpack.c.bf16 %v629_v18, %v629_v18  ;;  %v631_v20 = vsel %vm623_vm6, %v616_v11, %v627_v9 }
 0x1ab   :  { %v635_v22 = vpack.c.bf16 %v631_v20, %v631_v20 }
 0x1ac   :  { %931 = vmatprep.mubr.bf16.mxu1 %v633_v19 }
 0x1ad   :  { %971 = vmatprep.mubr.bf16.mxu0 %v635_v22  ;;  %932 = vmatmul.mubr.bf16.vlgmr.msra.gmra.mxu1 %v632_v21 }
 0x1ae   :  { %972 = vmatmul.mubr.bf16.vlgmr.msra.gmra.mxu0 %v634_v23 }
 0x26d   :  { %v1114_v24 = vpop.f32.mrf.mxu1 }
 0x26e   :  { %v1136_v25 = vpop.f32.mrf.mxu0 }
 0x26f   :  { %v1115_v27 = vpop.f32.mrf.mxu1 }
 0x270   :  { %v1116_v28 = vadd.f32 %v1115_v27, %v1114_v24  ;;  %v1137_v29 = vpop.f32.mrf.mxu0 }
 0x271   :  { %v1117_v30 = vpop.f32.mrf.mxu1  ;;  %v1138_v32 = vadd.f32 %v1137_v29, %v1136_v25 }
 0x272   :  { %v934_v31 = vadd.f32 %v1116_v28, %v1065_v26  ;;  %v1139_v33 = vpop.f32.mrf.mxu0 }
 0x273   :  { %v1118_v34 = vpop.f32.mrf.mxu1 }
 0x274   :  { %v974_v35 = vadd.f32 %v1138_v32, %v934_v31  ;;  %v1140_v36 = vpop.f32.mrf.mxu0 }
 0x276   :  { %980 = vst.msk [vmem:[#allocation5] sm:$0xff] %vm979_vm7, %v974_v35 }
 0x277   :  { %1312 = shalt.err (!%p1309_p9)
}
 0x278   :  { %990 = dma.vmem_to_hbm [thread:$0]  %s988_s29, 128, %s1517_s7, [#allocation4]  }
 0x279   :  { %1323 = dma.done.wait [#allocation4], 128  }
 0x27a   :  { %1324 = vsyncadd [#allocation4], 4294967168 }
 0x27b   :  { %994 = vsyncpa [#allocation3], 1 }
 0x27c   :  { %995 = vsyncpa [#allocation4], 1 }

</bundles_post_ra>
